<compile_context>
chip_gen: v7x
topology: tpu7x:2x2x1
jax: 0.10.0
libtpu: 0.0.40
codegen_flags: <defaults>
</compile_context>

<pallas_src>
import jax
import jax.numpy as jnp
from jax.experimental import pallas as pl
from jax.experimental.pallas import tpu as pltpu

LANE = 128
SUBLANE = 8


def _round_up(x, m):
    return ((x + m - 1) // m) * m


def _pad2d(x, rows, cols):
    r, c = x.shape
    if r == rows and c == cols:
        return x
    return jnp.pad(x, ((0, rows - r), (0, cols - c)))


def lstm_cell_kernel(x_ref, h_ref, cx_ref, wx_ref, wh_ref, b_ref, out_ref):
    # MXU: two dots instead of concat + one dot (removes an HBM round-trip).
    g = jnp.dot(x_ref[...], wx_ref[...], preferred_element_type=jnp.float32)
    g = g + jnp.dot(h_ref[...], wh_ref[...], preferred_element_type=jnp.float32)
    g = g + b_ref[...]                       # (TILE_B, C_pad) + (1, C_pad)

    sg = jax.nn.sigmoid(g)                   # f_gate == i_gate == o_gate (EUP)
    cg = jnp.tanh(g)                         # c_gate                     (EUP)

    # cx*f + c*i  with f == i == sg  ==  (cx + cg) * sg   (saves one vmul)
    cx_new = (cx_ref[...].astype(jnp.float32) + cg) * sg
    hx_new = jnp.tanh(cx_new) * sg

    # Fused lane-dense output slab: [:, :C_pad] = hx_new, [:, C_pad:] = cx_new.
    c_pad = cx_new.shape[1]
    out_ref[:, :c_pad] = hx_new.astype(out_ref.dtype)
    out_ref[:, c_pad:] = cx_new.astype(out_ref.dtype)


def prepare_params(weight, bias, input_size):
    """One-time (init-time) parameter prep: split, transpose, zero-pad.

    weight: (cell_size, input_size + hidden_size)  -- PyTorch Linear layout
    bias:   (cell_size,)
    Returns wx (IN_pad, C_pad), wh (HID_pad, C_pad), b2d (1, C_pad).
    """
    cell_size, d = weight.shape
    hidden_size = d - input_size
    c_pad = _round_up(cell_size, LANE)
    in_pad = _round_up(input_size, LANE)
    hid_pad = _round_up(hidden_size, LANE)

    wx = jnp.zeros((in_pad, c_pad), weight.dtype)
    wx = wx.at[:input_size, :cell_size].set(weight[:, :input_size].T)
    wh = jnp.zeros((hid_pad, c_pad), weight.dtype)
    wh = wh.at[:hidden_size, :cell_size].set(weight[:, input_size:].T)
    b2d = jnp.zeros((1, c_pad), bias.dtype).at[0, :cell_size].set(bias)
    return wx, wh, b2d


def my_lstm_cell(inp, hx, cx, wx, wh, b2d, cell_size):
    """Pallas MyLSTMCell.forward.

    inp: (B, input_size), hx: (B, hidden_size), cx: (B, cell_size)
    wx/wh/b2d: outputs of prepare_params (already padded/transposed).
    Returns (hx_new, cx_new), each (B, cell_size).
    """
    b = inp.shape[0]
    in_pad, c_pad = wx.shape
    hid_pad = wh.shape[0]

    tile_b = 256 if b >= 256 else _round_up(b, SUBLANE)
    b_pad = _round_up(b, tile_b)

    x_p = _pad2d(inp, b_pad, in_pad)
    h_p = _pad2d(hx, b_pad, hid_pad)
    c_p = _pad2d(cx, b_pad, c_pad)

    out = pl.pallas_call(
        lstm_cell_kernel,
        out_shape=jax.ShapeDtypeStruct((b_pad, 2 * c_pad), inp.dtype),
        grid=(b_pad // tile_b,),
        in_specs=[
            pl.BlockSpec((tile_b, in_pad), lambda i: (i, 0)),
            pl.BlockSpec((tile_b, hid_pad), lambda i: (i, 0)),
            pl.BlockSpec((tile_b, c_pad), lambda i: (i, 0)),
            pl.BlockSpec((in_pad, c_pad), lambda i: (0, 0)),   # weight: VMEM-resident
            pl.BlockSpec((hid_pad, c_pad), lambda i: (0, 0)),  # weight: VMEM-resident
            pl.BlockSpec((1, c_pad), lambda i: (0, 0)),
        ],
        out_specs=pl.BlockSpec((tile_b, 2 * c_pad), lambda i: (i, 0)),
        compiler_params=pltpu.CompilerParams(
            dimension_semantics=("parallel",)),
    )(x_p, h_p, c_p, wx, wh, b2d)

    hx_new = out[:b, :cell_size]
    cx_new = out[:b, c_pad:c_pad + cell_size]
    return hx_new, cx_new


def reference(inp, hx, cx, weight, bias):
    combined = jnp.concatenate([inp, hx], axis=1)
    g = combined @ weight.T + bias
    f_gate = jax.nn.sigmoid(g)
    i_gate = jax.nn.sigmoid(g)
    o_gate = jax.nn.sigmoid(g)
    c_gate = jnp.tanh(g)
    cx_new = cx * f_gate + c_gate * i_gate
    hx_new = jnp.tanh(cx_new) * o_gate
    return hx_new, cx_new


if __name__ == "__main__":
    batch = 8
    input_size = 16
    hidden_size = 32
    cell_size = 32
    D = input_size + hidden_size

    key = jax.random.PRNGKey(0)
    k_x, k_h, k_c, k_w, k_b = jax.random.split(key, 5)

    x = jax.random.normal(k_x, (batch, input_size), dtype=jnp.float32)
    hx = jax.random.normal(k_h, (batch, hidden_size), dtype=jnp.float32)
    cx = jax.random.normal(k_c, (batch, cell_size), dtype=jnp.float32)

    # nn.Linear default init: U(-1/sqrt(D), 1/sqrt(D)).
    bound = 1.0 / jnp.sqrt(jnp.float32(D))
    weight = jax.random.uniform(k_w, (cell_size, D), jnp.float32, -bound, bound)
    bias = jax.random.uniform(k_b, (cell_size,), jnp.float32, -bound, bound)

    # One-time parameter prep (would live at module-init time).
    wx, wh, b2d = prepare_params(weight, bias, input_size)

    hx_new, cx_new = my_lstm_cell(x, hx, cx, wx, wh, b2d, cell_size)
    jax.block_until_ready((hx_new, cx_new))

    hx_ref, cx_ref = reference(x, hx, cx, weight, bias)
    assert jnp.allclose(hx_new, hx_ref, atol=1e-5, rtol=1e-5)
    assert jnp.allclose(cx_new, cx_ref, atol=1e-5, rtol=1e-5)

    print("KERNEL_OK")
</pallas_src>

<mosaic_0001>
module attributes {stable_mosaic.version = 11 : i64} {
  func.func @lstm_cell_kernel(%arg0: i32, %arg1: memref<8x128xf32, #tpu.memory_space<vmem>>, %arg2: memref<8x128xf32, #tpu.memory_space<vmem>>, %arg3: memref<8x128xf32, #tpu.memory_space<vmem>>, %arg4: memref<128x128xf32, #tpu.memory_space<vmem>>, %arg5: memref<128x128xf32, #tpu.memory_space<vmem>>, %arg6: memref<1x128xf32, #tpu.memory_space<vmem>>, %arg7: memref<8x256xf32, #tpu.memory_space<vmem>>) attributes {dimension_semantics = [#tpu.dimension_semantics<parallel>], iteration_bounds = array<i64: 1>, scalar_prefetch = 0 : i64, scratch_operands = 0 : i64, tpu.core_type = #tpu.core_type<tc>, window_params = [{transform_indices = @transform_0, window_bounds = array<i64: 8, 128>}, {transform_indices = @transform_1, window_bounds = array<i64: 8, 128>}, {transform_indices = @transform_2, window_bounds = array<i64: 8, 128>}, {pipeline_mode = #tpu.pipeline_mode<synchronous>, transform_indices = @transform_3, window_bounds = array<i64: 128, 128>}, {pipeline_mode = #tpu.pipeline_mode<synchronous>, transform_indices = @transform_4, window_bounds = array<i64: 128, 128>}, {pipeline_mode = #tpu.pipeline_mode<synchronous>, transform_indices = @transform_5, window_bounds = array<i64: 1, 128>}, {transform_indices = @transform_6, window_bounds = array<i64: 8, 256>}]} {
    %c0 = arith.constant 0 : index
    %c0_0 = arith.constant 0 : index
    %0 = vector.load %arg1[%c0, %c0_0] : memref<8x128xf32, #tpu.memory_space<vmem>>, vector<8x128xf32>
    %c0_1 = arith.constant 0 : index
    %c0_2 = arith.constant 0 : index
    %1 = vector.load %arg4[%c0_1, %c0_2] : memref<128x128xf32, #tpu.memory_space<vmem>>, vector<128x128xf32>
    %cst = arith.constant dense<0.000000e+00> : vector<8x128xf32>
    %2 = tpu.matmul %0, %1, %cst {dimension_numbers = #tpu.dot_dimension_numbers<[1], [0], [0], [1], [0, 0, 1, 1], [], []>} : vector<8x128xf32>, vector<128x128xf32>, vector<8x128xf32> -> vector<8x128xf32>
    %c0_3 = arith.constant 0 : index
    %c0_4 = arith.constant 0 : index
    %3 = vector.load %arg2[%c0_3, %c0_4] : memref<8x128xf32, #tpu.memory_space<vmem>>, vector<8x128xf32>
    %c0_5 = arith.constant 0 : index
    %c0_6 = arith.constant 0 : index
    %4 = vector.load %arg5[%c0_5, %c0_6] : memref<128x128xf32, #tpu.memory_space<vmem>>, vector<128x128xf32>
    %cst_7 = arith.constant dense<0.000000e+00> : vector<8x128xf32>
    %5 = tpu.matmul %3, %4, %cst_7 {dimension_numbers = #tpu.dot_dimension_numbers<[1], [0], [0], [1], [0, 0, 1, 1], [], []>} : vector<8x128xf32>, vector<128x128xf32>, vector<8x128xf32> -> vector<8x128xf32>
    %6 = arith.addf %2, %5 : vector<8x128xf32>
    %c0_8 = arith.constant 0 : index
    %c0_9 = arith.constant 0 : index
    %7 = vector.load %arg6[%c0_8, %c0_9] : memref<1x128xf32, #tpu.memory_space<vmem>>, vector<1x128xf32>
    %8 = vector.broadcast %7 : vector<1x128xf32> to vector<8x128xf32>
    %9 = arith.addf %6, %8 : vector<8x128xf32>
    %10 = arith.negf %9 : vector<8x128xf32>
    %11 = math.exp %10 : vector<8x128xf32>
    %cst_10 = arith.constant 1.000000e+00 : f32
    %12 = vector.broadcast %cst_10 : f32 to vector<8x128xf32>
    %13 = arith.addf %12, %11 : vector<8x128xf32>
    %14 = arith.divf %12, %13 : vector<8x128xf32>
    %15 = math.tanh %9 : vector<8x128xf32>
    %c0_11 = arith.constant 0 : index
    %c0_12 = arith.constant 0 : index
    %16 = vector.load %arg3[%c0_11, %c0_12] : memref<8x128xf32, #tpu.memory_space<vmem>>, vector<8x128xf32>
    %17 = arith.addf %16, %15 : vector<8x128xf32>
    %18 = arith.mulf %17, %14 : vector<8x128xf32>
    %19 = math.tanh %18 : vector<8x128xf32>
    %20 = arith.mulf %19, %14 : vector<8x128xf32>
    %c0_13 = arith.constant 0 : index
    %c0_14 = arith.constant 0 : index
    %21 = vector.load %arg7[%c0_13, %c0_14] : memref<8x256xf32, #tpu.memory_space<vmem>>, vector<8x128xf32>
    tpu.vector_store %arg7[%c0_13, %c0_14], %20 {strides = array<i32>} : memref<8x256xf32, #tpu.memory_space<vmem>>, vector<8x128xf32>,
    %c0_15 = arith.constant 0 : index
    %c128 = arith.constant 128 : index
    %22 = vector.load %arg7[%c0_15, %c128] : memref<8x256xf32, #tpu.memory_space<vmem>>, vector<8x128xf32>
    tpu.vector_store %arg7[%c0_15, %c128], %18 {strides = array<i32>} : memref<8x256xf32, #tpu.memory_space<vmem>>, vector<8x128xf32>,
    return
  }
  func.func @transform_0(%arg0: i32) -> (i32, i32) {
    %c0_i32 = arith.constant 0 : i32
    %c0_i32_0 = arith.constant 0 : i32
    return %arg0, %c0_i32 : i32, i32
  }
  func.func @transform_1(%arg0: i32) -> (i32, i32) {
    %c0_i32 = arith.constant 0 : i32
    %c0_i32_0 = arith.constant 0 : i32
    return %arg0, %c0_i32 : i32, i32
  }
  func.func @transform_2(%arg0: i32) -> (i32, i32) {
    %c0_i32 = arith.constant 0 : i32
    %c0_i32_0 = arith.constant 0 : i32
    return %arg0, %c0_i32 : i32, i32
  }
  func.func @transform_3(%arg0: i32) -> (i32, i32) {
    %c0_i32 = arith.constant 0 : i32
    %c0_i32_0 = arith.constant 0 : i32
    %c0_i32_1 = arith.constant 0 : i32
    return %c0_i32, %c0_i32_0 : i32, i32
  }
  func.func @transform_4(%arg0: i32) -> (i32, i32) {
    %c0_i32 = arith.constant 0 : i32
    %c0_i32_0 = arith.constant 0 : i32
    %c0_i32_1 = arith.constant 0 : i32
    return %c0_i32, %c0_i32_0 : i32, i32
  }
  func.func @transform_5(%arg0: i32) -> (i32, i32) {
    %c0_i32 = arith.constant 0 : i32
    %c0_i32_0 = arith.constant 0 : i32
    %c0_i32_1 = arith.constant 0 : i32
    return %c0_i32, %c0_i32_0 : i32, i32
  }
  func.func @transform_6(%arg0: i32) -> (i32, i32) {
    %c0_i32 = arith.constant 0 : i32
    %c0_i32_0 = arith.constant 0 : i32
    return %arg0, %c0_i32 : i32, i32
  }
}

</mosaic_0001>

<bundles_post_ra>
// kernel: tpu_custom_call.1
= control target key start
LH: loop header
LB: loop body
LE: loop exit
PB: predicated region body
PF: predicated region fallthrough
CT: control target
= control target key end

     0   :  { %11 = vsyncpa [#allocation3], 0  ;;  %s762_s0 = inlined_call_operand.hbm [shape: f32[8,128], index: 0, kind: input, shape index: {}]   ;;  %s763_s1 = inlined_call_operand.hbm [shape: f32[8,128], index: 1, kind: input, shape index: {}]   ;;  %s764_s2 = inlined_call_operand.hbm [shape: f32[8,128], index: 2, kind: input, shape index: {}]   ;;  %s765_s3 = inlined_call_operand.hbm [shape: f32[128,128], index: 3, kind: input, shape index: {}]   ;;  %s766_s4 = inlined_call_operand.hbm [shape: f32[128,128], index: 4, kind: input, shape index: {}]   ;;  %s767_s5 = inlined_call_operand.vmem [shape: f32[1,128], index: 5, kind: input, shape index: {}]   ;;  %s768_s6 = inlined_call_operand.hbm [shape: f32[8,256], index: 6, kind: output, shape index: {}]  }
   0x1   :  { %12 = vsyncpa [#allocation6], 0 }
   0x2   :  { %13 = vsyncpa [#allocation9], 0 }
   0x3   :  { %14 = vsyncpa [#allocation4], 0  ;;  %s612_s21 = smov [#allocation5]   ;;  %s613_s23 = smov [#allocation8]  }
   0x4   :  { %s31_s22 = sshll.u32 %s612_s21, 4  ;;  %s50_s24 = sshll.u32 %s613_s23, 4  ;;  %s32_s22 = int_to_ptr.vmem [resolvable:$true] %s31_s22  ;;  %s658_s24 = int_to_ptr.vmem [resolvable:$true] %s50_s24 }
   0x5   :  { %s472_s27 = scalar_lea.hbm %s763_s1, 128 }
   0x6   :  { %p473_p0 = scmp.ne.s32.totalorder %s763_s1, %s472_s27  ;;  %p476_p1 = scmp.lt.u32.totalorder %s472_s27, %s763_s1 }
   0x8   :  { %p478_p2 = pnand %p476_p1, %p473_p0 }
   0xa   :  { %481 = shalt.err (!%p478_p2)
}
   0xb   :  { %s482_s8 = scalar_lea.vmem %s32_s22, 128  ;;  %p487_p4 = scmp.lt.s32.totalorder %s32_s22, %s32_s22 }
   0xc   :  { %p483_p3 = scmp.ne.s32.totalorder %s32_s22, %s482_s8  ;;  %p488_p5 = scmp.lt.s32.totalorder %s482_s8, %s482_s8 }
   0xe   :  { %p489_p6 = por %p488_p5, %p487_p4 }
  0x10   :  { %p490_p7 = pnand %p489_p6, %p483_p3 }
  0x12   :  { %493 = shalt.err (!%p490_p7)
}
  0x13   :  { %34 = dma.hbm_to_vmem [thread:$0]  %s763_s1, 128, %s32_s22, [#allocation6]  }
  0x14   :  { %s494_s13 = scalar_lea.hbm %s765_s3, 2048 }
  0x15   :  { %p495_p8 = scmp.ne.s32.totalorder %s765_s3, %s494_s13  ;;  %p498_p9 = scmp.lt.u32.totalorder %s494_s13, %s765_s3 }
  0x17   :  { %p500_p10 = pnand %p498_p9, %p495_p8 }
  0x19   :  { %503 = shalt.err (!%p500_p10)
}
  0x1a   :  { %s504_s18 = scalar_lea.vmem %s658_s24, 2048  ;;  %p509_p12 = scmp.lt.s32.totalorder %s658_s24, %s658_s24 }
  0x1b   :  { %p505_p11 = scmp.ne.s32.totalorder %s658_s24, %s504_s18  ;;  %p510_p13 = scmp.lt.s32.totalorder %s504_s18, %s504_s18 }
  0x1d   :  { %p511_p0 = por %p510_p13, %p509_p12 }
  0x1f   :  { %p512_p1 = pnand %p511_p0, %p505_p11 }
  0x21   :  { %515 = shalt.err (!%p512_p1)
}
  0x22   :  { %s614_s1 = smov 128   ;;  %s615_s19 = smov 8  }
  0x23   :  { %56 = dma.hbm_to_vmem [thread:$0]  %s765_s3, 2048, %s658_s24, [#allocation9], %s614_s1, %s614_s1, %s615_s19  }
  0x24   :  { %s616_s22 = smov [#allocation2]   ;;  %s617_s25 = smov [#allocation7]  }
  0x25   :  { %s21_s23 = sshll.u32 %s616_s22, 4  ;;  %s41_s26 = sshll.u32 %s617_s25, 4  ;;  %s22_s23 = int_to_ptr.vmem [resolvable:$true] %s21_s23  ;;  %s42_s26 = int_to_ptr.vmem [resolvable:$true] %s41_s26 }
  0x26   :  { %s516_s29 = scalar_lea.hbm %s762_s0, 128 }
  0x27   :  { %p517_p2 = scmp.ne.s32.totalorder %s762_s0, %s516_s29  ;;  %p520_p3 = scmp.lt.u32.totalorder %s516_s29, %s762_s0 }
  0x29   :  { %p522_p4 = pnand %p520_p3, %p517_p2 }
  0x2b   :  { %525 = shalt.err (!%p522_p4)
}
  0x2c   :  { %s526_s3 = scalar_lea.vmem %s22_s23, 128  ;;  %p531_p6 = scmp.lt.s32.totalorder %s22_s23, %s22_s23 }
  0x2d   :  { %p527_p5 = scmp.ne.s32.totalorder %s22_s23, %s526_s3  ;;  %p532_p7 = scmp.lt.s32.totalorder %s526_s3, %s526_s3 }
  0x2f   :  { %p533_p8 = por %p532_p7, %p531_p6 }
  0x31   :  { %p534_p9 = pnand %p533_p8, %p527_p5 }
  0x33   :  { %537 = shalt.err (!%p534_p9)
}
  0x34   :  { %24 = dma.hbm_to_vmem [thread:$0]  %s762_s0, 128, %s22_s23, [#allocation3]  }
  0x35   :  { %s538_s13 = scalar_lea.hbm %s764_s2, 128 }
  0x36   :  { %p539_p10 = scmp.ne.s32.totalorder %s764_s2, %s538_s13  ;;  %p542_p11 = scmp.lt.u32.totalorder %s538_s13, %s764_s2 }
  0x38   :  { %p544_p12 = pnand %p542_p11, %p539_p10 }
  0x3a   :  { %547 = shalt.err (!%p544_p12)
}
  0x3b   :  { %s548_s18 = scalar_lea.vmem %s42_s26, 128  ;;  %p553_p0 = scmp.lt.s32.totalorder %s42_s26, %s42_s26 }
  0x3c   :  { %p549_p13 = scmp.ne.s32.totalorder %s42_s26, %s548_s18  ;;  %p554_p1 = scmp.lt.s32.totalorder %s548_s18, %s548_s18 }
  0x3e   :  { %p555_p2 = por %p554_p1, %p553_p0 }
  0x40   :  { %p556_p3 = pnand %p555_p2, %p549_p13 }
  0x42   :  { %559 = shalt.err (!%p556_p3)
}
  0x43   :  { %44 = dma.hbm_to_vmem [thread:$0]  %s764_s2, 128, %s42_s26, [#allocation6]  }
  0x44   :  { %s618_s21 = smov [#allocation10]   ;;  %s560_s27 = scalar_lea.hbm %s766_s4, 2048 }
  0x45   :  { %s62_s22 = sshll.u32 %s618_s21, 4  ;;  %p561_p4 = scmp.ne.s32.totalorder %s766_s4, %s560_s27  ;;  %s63_s22 = int_to_ptr.vmem [resolvable:$true] %s62_s22 }
  0x46   :  { %p564_p5 = scmp.lt.u32.totalorder %s560_s27, %s766_s4 }
  0x48   :  { %p566_p6 = pnand %p564_p5, %p561_p4 }
  0x4a   :  { %569 = shalt.err (!%p566_p6)
}
  0x4b   :  { %s570_s8 = scalar_lea.vmem %s63_s22, 2048  ;;  %p575_p8 = scmp.lt.s32.totalorder %s63_s22, %s63_s22 }
  0x4c   :  { %p571_p7 = scmp.ne.s32.totalorder %s63_s22, %s570_s8  ;;  %p576_p9 = scmp.lt.s32.totalorder %s570_s8, %s570_s8 }
  0x4e   :  { %p577_p10 = por %p576_p9, %p575_p8 }
  0x50   :  { %p578_p11 = pnand %p577_p10, %p571_p7 }
  0x52   :  { %581 = shalt.err (!%p578_p11)
}
  0x53   :  { %68 = dma.hbm_to_vmem [thread:$0]  %s766_s4, 2048, %s63_s22, [#allocation9], %s614_s1, %s614_s1, %s615_s19  }
  0x54   :  { %604 = dma.done.wait [#allocation3], 128  }
  0x55   :  { %605 = vsyncadd [#allocation3], 4294967168 }
  0x56   :  { %606 = dma.done.wait [#allocation6], 256  }
  0x57   :  { %607 = vsyncadd [#allocation6], 4294967040 }
  0x58   :  { %608 = dma.done.wait [#allocation9], 4096  }
  0x59   :  { %609 = vsyncadd [#allocation9], 4294963200  ;;  %v619_v0 = vmov 0.0|0.0   ;;  %vm620_vm0 = vmmov 0   ;;  %v621_v1 = vmov 0.0   ;;  %v104_v2 = vld [vmem:[#allocation10] sm:$0xff] }
  0x5a   :  { %405 = vmatprep.subr.bf16.mxu0 %v619_v0  ;;  %429 = vmatprep.subr.bf16.mxu1 %v619_v0  ;;  %v105_v3 = vld [vmem:[#allocation10 + $0x8] sm:$0xff]  ;;  %v87_v4 = vld [vmem:[#allocation8] sm:$0xff]  ;;  %v106_v7 = vld [vmem:[#allocation10 + $0x10] sm:$0xff]  ;;  %s622_s19 = smov [#allocation11]  }
  0x5b   :  { %367 = vmatprep.mubr.msk.f32.mxu0 %vm620_vm0, %v621_v1  ;;  %402 = vmatprep.mubr.msk.f32.mxu1 %vm620_vm0, %v621_v1  ;;  %v406_v5 = vpack.c.bf16 %v105_v3, %v104_v2  ;;  %v88_v6 = vld [vmem:[#allocation8 + $0x8] sm:$0xff]  ;;  %v107_v8 = vld [vmem:[#allocation10 + $0x18] sm:$0xff]  ;;  %v89_v10 = vld [vmem:[#allocation8 + $0x10] sm:$0xff]  ;;  %s288_s9 = sshll.u32 %s622_s19, 4  ;;  %s289_s9 = int_to_ptr.vmem [resolvable:$true] %s288_s9 }
  0x5c   :  { %v430_v9 = vpack.c.bf16 %v88_v6, %v87_v4  ;;  %v90_v11 = vld [vmem:[#allocation8 + $0x18] sm:$0xff]  ;;  %v409_v12 = vpack.c.bf16 %v107_v8, %v106_v7  ;;  %v108_v14 = vld [vmem:[#allocation10 + $0x20] sm:$0xff]  ;;  %v109_v15 = vld [vmem:[#allocation10 + $0x28] sm:$0xff]  ;;  %p587_p13 = scmp.lt.s32.totalorder %s289_s9, %s289_s9 }
  0x5d   :  { %407 = vmatpush3.bf16.msra.mxu0 %v406_v5  ;;  %v433_v13 = vpack.c.bf16 %v90_v11, %v89_v10  ;;  %v91_v16 = vld [vmem:[#allocation8 + $0x20] sm:$0xff]  ;;  %v92_v17 = vld [vmem:[#allocation8 + $0x28] sm:$0xff]  ;;  %v412_v18 = vpack.c.bf16 %v109_v15, %v108_v14  ;;  %v110_v20 = vld [vmem:[#allocation10 + $0x30] sm:$0xff] }
  0x5e   :  { %431 = vmatpush3.bf16.msra.mxu1 %v430_v9  ;;  %408 = vmatprep.subr.bf16.mxu0 %v619_v0  ;;  %v436_v19 = vpack.c.bf16 %v92_v17, %v91_v16  ;;  %v111_v21 = vld [vmem:[#allocation10 + $0x38] sm:$0xff]  ;;  %v93_v22 = vld [vmem:[#allocation8 + $0x30] sm:$0xff]  ;;  %v112_v26 = vld [vmem:[#allocation10 + $0x40] sm:$0xff] }
  0x5f   :  { %432 = vmatprep.subr.bf16.mxu1 %v619_v0  ;;  %v94_v23 = vld [vmem:[#allocation8 + $0x38] sm:$0xff]  ;;  %v415_v24 = vpack.c.bf16 %v111_v21, %v110_v20  ;;  %v113_v27 = vld [vmem:[#allocation10 + $0x48] sm:$0xff]  ;;  %v95_v28 = vld [vmem:[#allocation8 + $0x40] sm:$0xff] }
  0x60   :  { %v439_v25 = vpack.c.bf16 %v94_v23, %v93_v22  ;;  %v96_v29 = vld [vmem:[#allocation8 + $0x48] sm:$0xff]  ;;  %v418_v30 = vpack.c.bf16 %v113_v27, %v112_v26  ;;  %v114_v32 = vld [vmem:[#allocation10 + $0x50] sm:$0xff]  ;;  %v115_v33 = vld [vmem:[#allocation10 + $0x58] sm:$0xff] }
  0x61   :  { %410 = vmatpush3.bf16.msra.mxu0 %v409_v12  ;;  %v442_v31 = vpack.c.bf16 %v96_v29, %v95_v28  ;;  %v97_v34 = vld [vmem:[#allocation8 + $0x50] sm:$0xff]  ;;  %v98_v35 = vld [vmem:[#allocation8 + $0x58] sm:$0xff]  ;;  %v421_v36 = vpack.c.bf16 %v115_v33, %v114_v32  ;;  %v116_v38 = vld [vmem:[#allocation10 + $0x60] sm:$0xff] }
  0x62   :  { %434 = vmatpush3.bf16.msra.mxu1 %v433_v13  ;;  %411 = vmatprep.subr.bf16.mxu0 %v619_v0  ;;  %v445_v37 = vpack.c.bf16 %v98_v35, %v97_v34  ;;  %v117_v39 = vld [vmem:[#allocation10 + $0x68] sm:$0xff]  ;;  %v99_v40 = vld [vmem:[#allocation8 + $0x60] sm:$0xff]  ;;  %v118_v44 = vld [vmem:[#allocation10 + $0x70] sm:$0xff] }
  0x63   :  { %435 = vmatprep.subr.bf16.mxu1 %v619_v0  ;;  %v100_v41 = vld [vmem:[#allocation8 + $0x68] sm:$0xff]  ;;  %v424_v42 = vpack.c.bf16 %v117_v39, %v116_v38  ;;  %v119_v45 = vld [vmem:[#allocation10 + $0x78] sm:$0xff]  ;;  %v101_v46 = vld [vmem:[#allocation8 + $0x70] sm:$0xff] }
  0x64   :  { %v448_v43 = vpack.c.bf16 %v100_v41, %v99_v40  ;;  %v102_v47 = vld [vmem:[#allocation8 + $0x78] sm:$0xff]  ;;  %v427_v48 = vpack.c.bf16 %v119_v45, %v118_v44  ;;  %v103_v50 = vld [vmem:[#allocation5] sm:$0xff]  ;;  %v86_v51 = vld [vmem:[#allocation2] sm:$0xff] }
  0x65   :  { %413 = vmatpush3.bf16.msra.mxu0 %v412_v18  ;;  %v451_v49 = vpack.c.bf16 %v102_v47, %v101_v46  ;;  %v299_v54 = vld [vmem:[%s767_s5] ss:$0 sm:$0xff]  ;;  %v275_v63 = vld [vmem:[#allocation7] sm:$0xff]  ;;  %s582_s5 = scalar_lea.vmem %s289_s9, 256 }
  0x66   :  { %437 = vmatpush3.bf16.msra.mxu1 %v436_v19  ;;  %414 = vmatprep.subr.bf16.mxu0 %v619_v0  ;;  %p583_p12 = scmp.ne.s32.totalorder %s289_s9, %s582_s5  ;;  %p588_p0 = scmp.lt.s32.totalorder %s582_s5, %s582_s5 }
  0x67   :  { %438 = vmatprep.subr.bf16.mxu1 %v619_v0 }
  0x68   :  { %p589_p1 = por %p588_p0, %p587_p13 }
  0x69   :  { %416 = vmatpush3.bf16.msra.mxu0 %v415_v24 }
  0x6a   :  { %440 = vmatpush3.bf16.msra.mxu1 %v439_v25  ;;  %417 = vmatprep.subr.bf16.mxu0 %v619_v0  ;;  %p590_p2 = pnand %p589_p1, %p583_p12 }
  0x6b   :  { %441 = vmatprep.subr.bf16.mxu1 %v619_v0 }
  0x6d   :  { %419 = vmatpush3.bf16.msra.mxu0 %v418_v30 }
  0x6e   :  { %443 = vmatpush3.bf16.msra.mxu1 %v442_v31  ;;  %420 = vmatprep.subr.bf16.mxu0 %v619_v0 }
  0x6f   :  { %444 = vmatprep.subr.bf16.mxu1 %v619_v0 }
  0x71   :  { %422 = vmatpush3.bf16.msra.mxu0 %v421_v36 }
  0x72   :  { %446 = vmatpush3.bf16.msra.mxu1 %v445_v37  ;;  %423 = vmatprep.subr.bf16.mxu0 %v619_v0 }
  0x73   :  { %447 = vmatprep.subr.bf16.mxu1 %v619_v0 }
  0x75   :  { %425 = vmatpush3.bf16.msra.mxu0 %v424_v42 }
  0x76   :  { %449 = vmatpush3.bf16.msra.mxu1 %v448_v43  ;;  %426 = vmatprep.subr.bf16.mxu0 %v619_v0 }
  0x77   :  { %450 = vmatprep.subr.bf16.mxu1 %v619_v0 }
  0x79   :  { %428 = vmatpush3.bf16.msra.mxu0 %v427_v48 }
  0x7a   :  { %452 = vmatpush3.bf16.msra.mxu1 %v451_v49 }
  0x7c   :  { %368 = vmatmul.mubr.f32.vlgmr.msra.gmra.mrb[0].mxu0 %v103_v50 }
  0x7d   :  { %403 = vmatmul.mubr.f32.vlgmr.msra.gmra.mrb[0].mxu1 %v86_v51 }
 0x14f   :  { %v186_v52 = vpop.f32.mrb[0].mxu0 }
 0x150   :  { %v256_v53 = vpop.f32.mrb[0].mxu1  ;;  %v369_v55 = vpop.f32.mrb[1].mxu0 }
 0x151   :  { %v257_v56 = vadd.f32 %v256_v53, %v186_v52  ;;  %v404_v57 = vpop.f32.mrb[1].mxu1 }
 0x153   :  { %v267_v58 = vadd.f32 %v299_v54, %v257_v56 }
 0x155   :  { %v300_v59 = vmul.f32 -1.442695, %v267_v58 }
 0x157   :  { %464 = vpow2.f32 %v300_v59 }
 0x158   :  { %466 = vtanh.f32 %v267_v58 }
 0x161   :  { %v465_v60 = vpop.eup %464 }
 0x162   :  { %v271_v61 = vadd.f32 1.0, %v465_v60  ;;  %v467_v62 = vpop.eup %466 }
 0x163   :  { %v276_v0 = vadd.f32 %v467_v62, %v275_v63 }
 0x164   :  { %468 = vrcp.f32 %v271_v61 }
 0x16e   :  { %v469_v1 = vpop.eup %468 }
 0x16f   :  { %v277_v2 = vmul.f32 %v469_v1, %v276_v0 }
 0x171   :  { %470 = vtanh.f32 %v277_v2  ;;  %281 = vst [vmem:[#allocation11 + $0x8] sm:$0xff] %v277_v2 }
 0x17b   :  { %v471_v3 = vpop.eup %470 }
 0x17c   :  { %v279_v4 = vmul.f32 %v471_v3, %v469_v1 }
 0x17e   :  { %280 = vst [vmem:[#allocation11] sm:$0xff] %v279_v4 }
 0x17f   :  { %593 = shalt.err (!%p590_p2)
}
 0x180   :  { %s594_s10 = scalar_lea.hbm %s768_s6, 256 }
 0x181   :  { %p595_p3 = scmp.ne.s32.totalorder %s768_s6, %s594_s10  ;;  %p598_p4 = scmp.lt.u32.totalorder %s594_s10, %s768_s6 }
 0x183   :  { %p600_p5 = pnand %p598_p4, %p595_p3 }
 0x185   :  { %603 = shalt.err (!%p600_p5)
}
 0x186   :  { %291 = dma.vmem_to_hbm [thread:$0]  %s289_s9, 256, %s768_s6, [#allocation4]  }
 0x187   :  { %610 = dma.done.wait [#allocation4], 256  }
 0x188   :  { %611 = vsyncadd [#allocation4], 4294967040 }
 0x189   :  { %295 = vsyncpa [#allocation3], 1 }
 0x18a   :  { %296 = vsyncpa [#allocation6], 1 }
 0x18b   :  { %297 = vsyncpa [#allocation9], 1 }
 0x18c   :  { %298 = vsyncpa [#allocation4], 1 }

</bundles_post_ra>
